<compile_context>
chip_gen: v5e
topology: v5e:2x2
jax: 0.10.0
libtpu: 0.0.40
codegen_flags: <defaults>
</compile_context>

<pallas_src>
import jax
import jax.numpy as jnp
from jax.experimental import pallas as pl
from jax.experimental.pallas import tpu as pltpu


def _round_up(x, m):
    return (x + m - 1) // m * m


def _pick_lane_tile(L, Cin, itemsize, max_tile=2048, vmem_budget=6 << 20):
    """Lane tile over H*W: a multiple of 128, shrunk (in 128 steps) if the
    double-buffered activation block (Cin x tile) would get large."""
    tl = min(max_tile, _round_up(L, 128))
    while tl > 128 and 2 * Cin * tl * itemsize > vmem_budget:
        tl -= 128
    return tl


# --------------------------------------------------------------------------- #
# Pallas kernel: one lane-tile of  out[n] = W @ x[n] + bias  (single-K path)
# --------------------------------------------------------------------------- #
def _outconv_kernel(x_ref, w_ref, b_ref, o_ref):
    # x_ref:(Cin, tL)  w_ref:(Cout, Cin)  b_ref:(Cout, 1)  o_ref:(Cout, tL)
    acc = jnp.dot(w_ref[...], x_ref[...], preferred_element_type=jnp.float32)
    o_ref[...] = (acc + b_ref[...].astype(jnp.float32)).astype(o_ref.dtype)


# --------------------------------------------------------------------------- #
# OutConv forward: 1x1 Conv2d with bias (PyTorch NCHW interface)
# --------------------------------------------------------------------------- #
def out_conv(x_nchw, weight, bias, *, max_lane_tile=2048):
    """x: (N, Cin, H, W); weight: (Cout, Cin, 1, 1) [PyTorch layout]; bias: (Cout,)."""
    N, Cin, H, W = x_nchw.shape
    Cout = weight.shape[0]
    L = H * W

    x3 = x_nchw.reshape(N, Cin, L)         # free reshape: NCHW is already contiguous
    w2 = weight.reshape(Cout, Cin)         # stays resident in VMEM across grid steps
    b2 = bias.reshape(Cout, 1)

    tl = _pick_lane_tile(L, Cin, jnp.dtype(x_nchw.dtype).itemsize, max_lane_tile)
    Lp = _round_up(L, tl)
    if Lp != L:                            # only when H*W is not lane-tile aligned
        x3 = jnp.pad(x3, ((0, 0), (0, 0), (0, Lp - L)))

    grid = (N, Lp // tl)                   # both axes parallel (megacore-friendly)
    out = pl.pallas_call(
        _outconv_kernel,
        out_shape=jax.ShapeDtypeStruct((N, Cout, Lp), x_nchw.dtype),
        grid=grid,
        in_specs=[
            pl.BlockSpec((None, Cin, tl), lambda n, l: (n, 0, l)),   # activations
            pl.BlockSpec((Cout, Cin), lambda n, l: (0, 0)),          # weight
            pl.BlockSpec((Cout, 1), lambda n, l: (0, 0)),            # bias
        ],
        out_specs=pl.BlockSpec((None, Cout, tl), lambda n, l: (n, 0, l)),
        compiler_params=pltpu.CompilerParams(
            dimension_semantics=("parallel", "parallel")),
    )(x3, w2, b2)

    if Lp != L:
        out = out[:, :, :L]                # fuses with the reshape below in XLA
    return out.reshape(N, Cout, H, W)      # already NCHW: no transpose needed


# --------------------------------------------------------------------------- #
if __name__ == "__main__":
    # Shapes consistent with the U-Net's OutConv(base_c=16, n_classes=1).
    BATCH, C_IN, C_OUT, H, W = 2, 16, 1, 16, 16

    key = jax.random.PRNGKey(0)
    kx, kw, kb = jax.random.split(key, 3)
    x = jax.random.normal(kx, (BATCH, C_IN, H, W), jnp.float32)
    weight = jax.random.normal(kw, (C_OUT, C_IN, 1, 1), jnp.float32) / jnp.sqrt(C_IN)
    bias = 0.1 * jax.random.normal(kb, (C_OUT,), jnp.float32)

    fwd = jax.jit(out_conv)
    out = jax.block_until_ready(fwd(x, weight, bias))

    # Pure-JAX reference (nn.Conv2d with kernel_size=1 + bias).
    ref = jnp.einsum('nchw,oc->nohw', x, weight[:, :, 0, 0]) \
        + bias[None, :, None, None]

    assert out.shape == (BATCH, C_OUT, H, W), out.shape
    assert out.dtype == jnp.float32
    assert bool(jnp.all(jnp.isfinite(out)))
    assert bool(jnp.allclose(out, ref, atol=1e-4, rtol=1e-4))
    print("KERNEL_OK")
</pallas_src>

<mosaic_0001>
module attributes {stable_mosaic.version = 11 : i64} {
  func.func @_outconv_kernel(%arg0: i32, %arg1: i32, %arg2: memref<1x16x256xf32, #tpu.memory_space<vmem>>, %arg3: memref<1x16xf32, #tpu.memory_space<vmem>>, %arg4: memref<1x1xf32, #tpu.memory_space<vmem>>, %arg5: memref<1x1x256xf32, #tpu.memory_space<vmem>>) attributes {dimension_semantics = [#tpu.dimension_semantics<parallel>, #tpu.dimension_semantics<parallel>], iteration_bounds = array<i64: 2, 1>, scalar_prefetch = 0 : i64, scratch_operands = 0 : i64, tpu.core_type = #tpu.core_type<tc>, window_params = [{transform_indices = @transform_0, window_bounds = array<i64: 1, 16, 256>}, {pipeline_mode = #tpu.pipeline_mode<synchronous>, transform_indices = @transform_1, window_bounds = array<i64: 1, 16>}, {pipeline_mode = #tpu.pipeline_mode<synchronous>, transform_indices = @transform_2, window_bounds = array<i64: 1, 1>}, {transform_indices = @transform_3, window_bounds = array<i64: 1, 1, 256>}]} {
    %c0 = arith.constant 0 : index
    %c0_0 = arith.constant 0 : index
    %0 = vector.load %arg3[%c0, %c0_0] : memref<1x16xf32, #tpu.memory_space<vmem>>, vector<1x16xf32>
    %c0_1 = arith.constant 0 : index
    %c0_2 = arith.constant 0 : index
    %c0_3 = arith.constant 0 : index
    %1 = vector.load %arg2[%c0_1, %c0_2, %c0_3] : memref<1x16x256xf32, #tpu.memory_space<vmem>>, vector<1x16x256xf32>
    %2 = vector.shape_cast %1 : vector<1x16x256xf32> to vector<16x256xf32>
    %cst = arith.constant dense<0.000000e+00> : vector<1x256xf32>
    %3 = tpu.matmul %0, %2, %cst {dimension_numbers = #tpu.dot_dimension_numbers<[1], [0], [0], [1], [0, 0, 1, 1], [], []>} : vector<1x16xf32>, vector<16x256xf32>, vector<1x256xf32> -> vector<1x256xf32>
    %c0_4 = arith.constant 0 : index
    %c0_5 = arith.constant 0 : index
    %4 = vector.load %arg4[%c0_4, %c0_5] : memref<1x1xf32, #tpu.memory_space<vmem>>, vector<1x1xf32>
    %5 = vector.broadcast %4 : vector<1x1xf32> to vector<1x256xf32>
    %6 = arith.addf %3, %5 : vector<1x256xf32>
    %c0_6 = arith.constant 0 : index
    %c0_7 = arith.constant 0 : index
    %c0_8 = arith.constant 0 : index
    %7 = vector.load %arg5[%c0_6, %c0_7, %c0_8] : memref<1x1x256xf32, #tpu.memory_space<vmem>>, vector<1x1x256xf32>
    %8 = vector.shape_cast %7 : vector<1x1x256xf32> to vector<1x256xf32>
    %9 = vector.shape_cast %6 : vector<1x256xf32> to vector<1x1x256xf32>
    tpu.vector_store %arg5[%c0_6, %c0_7, %c0_8], %9 {strides = array<i32>} : memref<1x1x256xf32, #tpu.memory_space<vmem>>, vector<1x1x256xf32>,
    return
  }
  func.func @transform_0(%arg0: i32, %arg1: i32) -> (i32, i32, i32) {
    %c0_i32 = arith.constant 0 : i32
    %c0_i32_0 = arith.constant 0 : i32
    return %arg0, %c0_i32, %arg1 : i32, i32, i32
  }
  func.func @transform_1(%arg0: i32, %arg1: i32) -> (i32, i32) {
    %c0_i32 = arith.constant 0 : i32
    %c0_i32_0 = arith.constant 0 : i32
    %c0_i32_1 = arith.constant 0 : i32
    return %c0_i32, %c0_i32_0 : i32, i32
  }
  func.func @transform_2(%arg0: i32, %arg1: i32) -> (i32, i32) {
    %c0_i32 = arith.constant 0 : i32
    %c0_i32_0 = arith.constant 0 : i32
    %c0_i32_1 = arith.constant 0 : i32
    return %c0_i32, %c0_i32_0 : i32, i32
  }
  func.func @transform_3(%arg0: i32, %arg1: i32) -> (i32, i32, i32) {
    %c0_i32 = arith.constant 0 : i32
    %c0_i32_0 = arith.constant 0 : i32
    return %arg0, %c0_i32, %arg1 : i32, i32, i32
  }
}

</mosaic_0001>

<bundles_post_ra>
// kernel: out_conv.1
= control target key start
LH: loop header
LB: loop body
LE: loop exit
PB: predicated region body
PF: predicated region fallthrough
CT: control target
= control target key end

     0   :  { %s445_s14 = smov 0   ;;  %s447_s15 = smov 0   ;;  %s481_s0 = inlined_call_operand.vmem [shape: f32[2,16,256], index: 0, kind: input, shape index: {}]   ;;  %s482_s1 = inlined_call_operand.vmem [shape: f32[1,16], index: 1, kind: input, shape index: {}]   ;;  %s483_s2 = inlined_call_operand.<no memory space> [shape: f32[1,1], index: 2, kind: input, shape index: {}]   ;;  %s484_s3 = inlined_call_operand.vmem [shape: f32[2,1,256], index: 3, kind: output, shape index: {}]  }
   0x1   :  { %v8_v0 = vstv %s483_s2  ;;  %s449_s16 = smov 0  }
   0x2   :  { %9 = vst [vmem:[#allocation2] sm:$0x1] %v8_v0 }
   0x3 LB: > { %s27_s2 = sadd.s32 1, %s415_s15  ;;  %p362_p0 = scmp.ge.s32.totalorder %s419_s16, 1  ;;  %s419_s16 = sphi %s449_s16, %s15_s16   ;;  %s415_s15 = sphi %s447_s15, %s486_s15   ;;  %s411_s14 = sphi %s445_s14, %s485_s14  }
   0x4   : > { %p29_p1 = scmp.ge.s32.totalorder %s27_s2, 2  ;;  %p160_p2 = scmp.lt.s32.totalorder %s419_s16, 3 }
   0x6   : > { %s488_s2 = smov (%p29_p1, %s27_s2), 0  ;;  %p161_p3 = pnand %p362_p0, %p160_p2 }
   0x7   : > { %p192_p4 = scmp.lt.s32.totalorder (!%p161_p3), %s411_s14, 1 }
   0x8   : > { %164 = sbr.rel (%p161_p3) target bundleno = 152 (0x98), region = 32 }
   0xd   : > { %v421_v1 = vmov 0   ;;  %v215_v2 = vld [vmem:[#allocation2] sm:$0x1]  ;;  %s490_s14 = smov (!%p192_p4, %s411_s14), 1  ;;  %vm222_vm0 = vcmask 130048   ;;  %v272_v10 = vlaneseq  ;;  %vm269_vm1 = vcmask 1040384  }
   0xe   : > { %396 = vset.pattern.permute.xlu0 %v421_v1  ;;  %s370_s17 = sshll.u32 %s490_s14, 5  ;;  %v210_v7 = vld [vmem:[%s482_s1] sm:$0x1]  ;;  %s365_s23 = sshll.u32 %s490_s14, 1 }
   0xf   : > { %218 = vperm.xlu0 %396, %v215_v2   ;;  %s199_s20 = scalar_lea.vmem %s481_s0, %s370_s17  ;;  %s208_s26 = scalar_lea.vmem %s484_s3, %s365_s23  ;;  %vm274_vm2 = vcmp.lt.s32.totalorder %v272_v10, 256 }
  0x10   : > { %v213_v3 = vld [vmem:[%s199_s20 + $0x10] sm:$0xff]  ;;  %v214_v4 = vld [vmem:[%s199_s20 + $0x18] sm:$0xff]  ;;  %v211_v5 = vld [vmem:[%s199_s20] sm:$0xff] }
  0x11   : > { %240 = vmatpush.msra.mxu0 %v213_v3  ;;  %260 = vmatpush.msra.mxu1 %v214_v4  ;;  %v212_v6 = vld [vmem:[%s199_s20 + $0x8] sm:$0xff] }
  0x13   : > { %241 = vmatpush.msra.mxu0 %v211_v5  ;;  %261 = vmatpush.msra.mxu1 %v212_v6 }
  0x14   : > { %366 = vmatmul.msk.f32.vlgmr.msra.gmra.mxu0 %vm222_vm0, %v210_v7  ;;  %367 = vmatmul.msk.f32.vlgmr.msra.gmra.mxu1 %vm222_vm0, %v210_v7 }
  0x81   : > { %v219_v8 = vpop.permute.xlu0 %218 }
  0x82   : > { %v221_v9 = vperm.slane %v219_v8, 0 }
  0x91   : > { %v243_v11 = vpop.f32.mrf.mxu0  ;;  %v263_v12 = vpop.f32.mrf.mxu1 }
  0x92   : > { %v264_v13 = vadd.f32 %v263_v12, %v221_v9  ;;  %v244_v14 = vadd.f32 %v243_v11, %v221_v9 }
  0x94   : > { %v268_v15 = vrot.slane %v264_v13, 7 }
  0x96   : > { %v270_v16 = vsel %vm269_vm1, %v244_v14, %v268_v15 }
  0x97   : > { %276 = vst.msk [vmem:[%s208_s26] sm:$0x3] %vm274_vm2, %v270_v16 }
  0x98 PF: > { %s15_s16 = sadd.s32 1, %s419_s16   ;;  %s485_s14 = smov %s415_s15 }
  0x99   : > { %p12_p5 = scmp.ge.s32.totalorder %s15_s16, 4   ;;  %s486_s15 = smov %s488_s2 }
  0x9b   :  { %14 = sbr.rel (!%p12_p5) target bundleno = 3 (0x3), region = 62 }

</bundles_post_ra>
